<compile_context>
chip_gen: v7x
topology: tpu7x:2x2x1
jax: 0.10.0
libtpu: 0.0.40
codegen_flags: <defaults>
</compile_context>

<pallas_src>
import functools

import jax
import jax.numpy as jnp
from jax import lax
from jax.experimental import pallas as pl
from jax.experimental.pallas import tpu as pltpu

BN_EPS = 1e-5


# ---------------------------------------------------------------------------
# BatchNorm batch-statistics reduction kernels (gridded over the batch).
# ---------------------------------------------------------------------------
def _bn_sum_kernel(x_ref, sum_ref):
    @pl.when(pl.program_id(0) == 0)
    def _init():
        sum_ref[...] = jnp.zeros_like(sum_ref)

    x = x_ref[...].astype(jnp.float32)                 # (1, H, W, C)
    c = x.shape[-1]
    sum_ref[...] += jnp.sum(x.reshape(-1, c), axis=0, keepdims=True)


def _bn_sqdiff_kernel(x_ref, mean_ref, sq_ref):
    @pl.when(pl.program_id(0) == 0)
    def _init():
        sq_ref[...] = jnp.zeros_like(sq_ref)

    x = x_ref[...].astype(jnp.float32)                 # (1, H, W, C)
    c = x.shape[-1]
    d = x.reshape(-1, c) - mean_ref[...]               # (H*W, C) - (1, C)
    sq_ref[...] += jnp.sum(d * d, axis=0, keepdims=True)


# ---------------------------------------------------------------------------
# Main fused kernel: BN-apply -> conv3x3 -> SiLU -> conv3x3 (+ fused residual)
# ---------------------------------------------------------------------------
def _im2col_3x3(a):
    """(H, W, C) -> (H*W, 9*C) SAME-padded 3x3 patches.

    Built from the 9 shifted views concatenated along the lane (channel)
    axis, so each conv becomes a single MXU matmul with K = 9*C — no padded
    scratch buffer, no masked interior stores, no 9-way accumulator."""
    H, W, C = a.shape
    zrow = jnp.zeros((1, W, C), a.dtype)
    zcol = jnp.zeros((H, 1, C), a.dtype)
    rows = (jnp.concatenate([zrow, a[:-1]], axis=0),   # kh = 0
            a,                                         # kh = 1
            jnp.concatenate([a[1:], zrow], axis=0))    # kh = 2
    taps = []
    for r in rows:
        taps.append(jnp.concatenate([zcol, r[:, :-1]], axis=1))   # kw = 0
        taps.append(r)                                            # kw = 1
        taps.append(jnp.concatenate([r[:, 1:], zcol], axis=1))    # kw = 2
    return jnp.concatenate(taps, axis=-1).reshape(H * W, 9 * C)


def _residual_block_kernel(residual, x_ref, scale_ref, shift_ref, w1_ref,
                           w2_ref, o_ref):
    # x_ref: (1, H, W, Cin) NHWC block — one image per grid step.
    _, H, W, Cin = x_ref.shape
    Cout = o_ref.shape[-1]

    xf = x_ref[0].astype(jnp.float32)                  # (H, W, Cin)

    # BatchNorm2d (training-mode batch stats pre-folded into scale/shift).
    xn = (xf * scale_ref[...].reshape(1, 1, Cin)
          + shift_ref[...].reshape(1, 1, Cin))

    # Conv 3x3 SAME #1 : single fused im2col matmul, bf16 operands, f32 acc.
    p1 = _im2col_3x3(xn.astype(jnp.bfloat16))          # (H*W, 9*Cin)
    h = jnp.dot(p1, w1_ref[...], preferred_element_type=jnp.float32)

    # SiLU in f32.
    h = h * jax.nn.sigmoid(h)
    h = h.reshape(H, W, -1)

    # Conv 3x3 SAME #2 (+ 1x1 residual conv fused as extra K rows).
    p2 = _im2col_3x3(h.astype(jnp.bfloat16))           # (H*W, 9*Cmid)
    if residual:
        xr = xf.astype(jnp.bfloat16).reshape(H * W, Cin)
        p2 = jnp.concatenate([p2, xr], axis=-1)        # K += Cin
        y = jnp.dot(p2, w2_ref[...], preferred_element_type=jnp.float32)
    else:
        y = jnp.dot(p2, w2_ref[...], preferred_element_type=jnp.float32)
        y = y + xf.reshape(H * W, Cin)                 # identity skip (Cin == Cout)

    o_ref[...] = y.reshape(1, H, W, Cout).astype(o_ref.dtype)


# ---------------------------------------------------------------------------
# Wrapper
# ---------------------------------------------------------------------------
def residual_block_pallas(x_nchw, params, residual):
    """x_nchw: (N, Cin, H, W) float32; returns (N, Cout, H, W) float32."""
    N, Cin, H, W = x_nchw.shape
    Cmid = params["w1"].shape[0]
    Cout = params["w2"].shape[0]
    if not residual:
        assert Cin == Cout, "residual=False requires in_channels == out_channels"

    # TODO(synk): keep the surrounding model NHWC end-to-end so these relayout
    # transposes disappear; they are wrapper glue for the NCHW interface.
    x = jnp.transpose(x_nchw, (0, 2, 3, 1)).astype(jnp.float32)   # NHWC

    x_spec = pl.BlockSpec((1, H, W, Cin), lambda n: (n, 0, 0, 0))
    vec_spec = pl.BlockSpec((1, Cin), lambda n: (0, 0))
    red_params = pltpu.CompilerParams(dimension_semantics=("arbitrary",))

    # ---- BatchNorm2d batch statistics: two-pass gridded reductions ---------
    count = float(N * H * W)
    ch_sum = pl.pallas_call(
        _bn_sum_kernel,
        out_shape=jax.ShapeDtypeStruct((1, Cin), jnp.float32),
        grid=(N,), in_specs=[x_spec], out_specs=vec_spec,
        compiler_params=red_params)(x)
    mean = ch_sum / count

    ch_sq = pl.pallas_call(
        _bn_sqdiff_kernel,
        out_shape=jax.ShapeDtypeStruct((1, Cin), jnp.float32),
        grid=(N,), in_specs=[x_spec, vec_spec], out_specs=vec_spec,
        compiler_params=red_params)(x, mean)
    var = ch_sq / count            # biased variance (PyTorch train-mode BN)

    gamma = params["bn_gamma"].reshape(1, Cin).astype(jnp.float32)
    beta = params["bn_beta"].reshape(1, Cin).astype(jnp.float32)
    scale = gamma * lax.rsqrt(var + BN_EPS)
    shift = beta - mean * scale

    # ---- weights: PyTorch (O, I, kH, kW) -> im2col (kH*kW*I, O), bf16 ------
    w1 = jnp.transpose(params["w1"], (2, 3, 1, 0)).reshape(9 * Cin, Cmid)
    w1 = w1.astype(jnp.bfloat16)
    w2 = jnp.transpose(params["w2"], (2, 3, 1, 0)).reshape(9 * Cmid, Cout)
    w2 = w2.astype(jnp.bfloat16)
    if residual:
        wres = params["wres"].reshape(Cout, Cin).T.astype(jnp.bfloat16)
        w2 = jnp.concatenate([w2, wres], axis=0)       # fuse 1x1 residual conv
    k2 = w2.shape[0]

    # ---- VMEM budget: per-step footprint (double buffers) + headroom -------
    est = (2 * H * W * (Cin + Cout) * 4                # in/out blocks, x2 bufs
           + H * W * (9 * Cin + k2) * 2                # bf16 im2col patches
           + H * W * (Cin + Cmid + Cout) * 4           # f32 activations
           + 2 * (9 * Cin * Cmid + k2 * Cout) * 2)     # bf16 weights, x2 bufs
    vmem_limit = int(min(128 * 1024 * 1024, max(32 * 1024 * 1024, 2 * est)))

    kernel = functools.partial(_residual_block_kernel, residual)
    out_nhwc = pl.pallas_call(
        kernel,
        out_shape=jax.ShapeDtypeStruct((N, H, W, Cout), jnp.float32),
        grid=(N,),
        in_specs=[
            x_spec,
            vec_spec,                                   # BN scale
            vec_spec,                                   # BN shift
            pl.BlockSpec((9 * Cin, Cmid), lambda n: (0, 0)),
            pl.BlockSpec((k2, Cout), lambda n: (0, 0)),
        ],
        out_specs=pl.BlockSpec((1, H, W, Cout), lambda n: (n, 0, 0, 0)),
        compiler_params=pltpu.CompilerParams(
            dimension_semantics=("parallel",),          # megacore over batch
            vmem_limit_bytes=vmem_limit),
    )(x, scale, shift, w1, w2)

    # TODO(synk): for very large H*W*C (e.g. 64x64x256 on v7x's 64 MiB VMEM),
    # additionally tile the spatial dim with a 1-row halo per tile.
    return jnp.transpose(out_nhwc, (0, 3, 1, 2))        # NHWC -> NCHW


# ---------------------------------------------------------------------------
# Pure-JAX reference (NCHW, mirrors the PyTorch module in train mode)
# ---------------------------------------------------------------------------
def residual_block_reference(x, params, residual):
    x = x.astype(jnp.float32)
    _, Cin, _, _ = x.shape
    mean = jnp.mean(x, axis=(0, 2, 3), keepdims=True)
    var = jnp.mean(jnp.square(x - mean), axis=(0, 2, 3), keepdims=True)
    xn = (x - mean) / jnp.sqrt(var + BN_EPS)
    xn = xn * params["bn_gamma"].reshape(1, Cin, 1, 1) \
            + params["bn_beta"].reshape(1, Cin, 1, 1)
    dn = ("NCHW", "OIHW", "NCHW")
    h = lax.conv_general_dilated(xn, params["w1"], (1, 1), "SAME",
                                 dimension_numbers=dn)
    h = h * jax.nn.sigmoid(h)
    h = lax.conv_general_dilated(h, params["w2"], (1, 1), "SAME",
                                 dimension_numbers=dn)
    if residual:
        res = lax.conv_general_dilated(x, params["wres"], (1, 1), "SAME",
                                       dimension_numbers=dn)
    else:
        res = x
    return h + res


if __name__ == "__main__":
    key = jax.random.PRNGKey(0)

    # Case 1: residual=True, in=4 -> out=8 (mid=out), spatial 16x16, batch 2.
    N, Cin, Cout, H, W = 2, 4, 8, 16, 16
    Cmid = Cout
    k_x, k_g, k_b, k_w1, k_w2, k_wr, k_x2, k_p2 = jax.random.split(key, 8)
    x = jax.random.normal(k_x, (N, Cin, H, W), jnp.float32)
    params = {
        "bn_gamma": 1.0 + 0.1 * jax.random.normal(k_g, (Cin,), jnp.float32),
        "bn_beta": 0.1 * jax.random.normal(k_b, (Cin,), jnp.float32),
        "w1": 0.2 * jax.random.normal(k_w1, (Cmid, Cin, 3, 3), jnp.float32),
        "w2": 0.2 * jax.random.normal(k_w2, (Cout, Cmid, 3, 3), jnp.float32),
        "wres": 0.2 * jax.random.normal(k_wr, (Cout, Cin, 1, 1), jnp.float32),
    }
    out = jax.block_until_ready(residual_block_pallas(x, params, residual=True))
    ref = residual_block_reference(x, params, residual=True)
    assert out.shape == (N, Cout, H, W)
    assert jnp.allclose(out, ref, atol=5e-2, rtol=5e-2), \
        f"residual=True max abs err = {jnp.max(jnp.abs(out - ref))}"

    # Case 2: residual=False (identity skip), in = out = 8.
    C2 = 8
    kk = jax.random.split(k_p2, 4)
    x2 = jax.random.normal(k_x2, (N, C2, H, W), jnp.float32)
    params2 = {
        "bn_gamma": 1.0 + 0.1 * jax.random.normal(kk[0], (C2,), jnp.float32),
        "bn_beta": 0.1 * jax.random.normal(kk[1], (C2,), jnp.float32),
        "w1": 0.2 * jax.random.normal(kk[2], (C2, C2, 3, 3), jnp.float32),
        "w2": 0.2 * jax.random.normal(kk[3], (C2, C2, 3, 3), jnp.float32),
    }
    out2 = jax.block_until_ready(residual_block_pallas(x2, params2, residual=False))
    ref2 = residual_block_reference(x2, params2, residual=False)
    assert out2.shape == (N, C2, H, W)
    assert jnp.allclose(out2, ref2, atol=5e-2, rtol=5e-2), \
        f"residual=False max abs err = {jnp.max(jnp.abs(out2 - ref2))}"

    print("KERNEL_OK")
</pallas_src>

<mosaic_0001>
module attributes {stable_mosaic.version = 11 : i64} {
  func.func @_bn_sum_kernel(%arg0: i32, %arg1: memref<1x16x16x4xf32, #tpu.memory_space<vmem>>, %arg2: memref<1x4xf32, #tpu.memory_space<vmem>>) attributes {dimension_semantics = [#tpu.dimension_semantics<arbitrary>], iteration_bounds = array<i64: 2>, scalar_prefetch = 0 : i64, scratch_operands = 0 : i64, tpu.core_type = #tpu.core_type<tc>, window_params = [{transform_indices = @transform_0, window_bounds = array<i64: 1, 16, 16, 4>}, {pipeline_mode = #tpu.pipeline_mode<synchronous>, transform_indices = @transform_1, window_bounds = array<i64: 1, 4>}]} {
    %c0_i32 = arith.constant 0 : i32
    %0 = arith.cmpi eq, %arg0, %c0_i32 : i32
    %1 = arith.extui %0 : i1 to i32
    %c0_i32_0 = arith.constant 0 : i32
    %2 = arith.cmpi ne, %1, %c0_i32_0 : i32
    scf.if %2 {
      %cst_8 = arith.constant 0.000000e+00 : f32
      %10 = vector.broadcast %cst_8 : f32 to vector<1x4xf32>
      %c0_9 = arith.constant 0 : index
      %c0_10 = arith.constant 0 : index
      %11 = vector.load %arg2[%c0_9, %c0_10] : memref<1x4xf32, #tpu.memory_space<vmem>>, vector<1x4xf32>
      tpu.vector_store %arg2[%c0_9, %c0_10], %10 {strides = array<i32>} : memref<1x4xf32, #tpu.memory_space<vmem>>, vector<1x4xf32>,
    } else {
    }
    %c0 = arith.constant 0 : index
    %c0_1 = arith.constant 0 : index
    %c0_2 = arith.constant 0 : index
    %c0_3 = arith.constant 0 : index
    %3 = vector.load %arg1[%c0, %c0_1, %c0_2, %c0_3] : memref<1x16x16x4xf32, #tpu.memory_space<vmem>>, vector<1x16x16x4xf32>
    %c0_4 = arith.constant 0 : index
    %c0_5 = arith.constant 0 : index
    %4 = vector.load %arg2[%c0_4, %c0_5] : memref<1x4xf32, #tpu.memory_space<vmem>>, vector<1x4xf32>
    %5 = vector.shape_cast %3 : vector<1x16x16x4xf32> to vector<256x4xf32>
    %cst = arith.constant dense<0.000000e+00> : vector<4xf32>
    %6 = vector.multi_reduction <add>, %5, %cst [0] : vector<256x4xf32> to vector<4xf32>
    %7 = vector.shape_cast %6 : vector<4xf32> to vector<1x4xf32>
    %8 = arith.addf %4, %7 : vector<1x4xf32>
    %c0_6 = arith.constant 0 : index
    %c0_7 = arith.constant 0 : index
    %9 = vector.load %arg2[%c0_6, %c0_7] : memref<1x4xf32, #tpu.memory_space<vmem>>, vector<1x4xf32>
    tpu.vector_store %arg2[%c0_6, %c0_7], %8 {strides = array<i32>} : memref<1x4xf32, #tpu.memory_space<vmem>>, vector<1x4xf32>,
    return
  }
  func.func @transform_0(%arg0: i32) -> (i32, i32, i32, i32) {
    %c0_i32 = arith.constant 0 : i32
    %c0_i32_0 = arith.constant 0 : i32
    %c0_i32_1 = arith.constant 0 : i32
    %c0_i32_2 = arith.constant 0 : i32
    return %arg0, %c0_i32, %c0_i32_0, %c0_i32_1 : i32, i32, i32, i32
  }
  func.func @transform_1(%arg0: i32) -> (i32, i32) {
    %c0_i32 = arith.constant 0 : i32
    %c0_i32_0 = arith.constant 0 : i32
    %c0_i32_1 = arith.constant 0 : i32
    return %c0_i32, %c0_i32_0 : i32, i32
  }
}

</mosaic_0001>

<bundles_post_ra>
// kernel: tpu_custom_call.1
= control target key start
LH: loop header
LB: loop body
LE: loop exit
PB: predicated region body
PF: predicated region fallthrough
CT: control target
= control target key end

     0   :  { %6 = vsyncpa [#allocation3], 0  ;;  %s339_s6 = smov 0   ;;  %s447_s0 = inlined_call_operand.vmem [shape: f32[2,16,16,4], index: 0, kind: input, shape index: {}]   ;;  %s448_s1 = inlined_call_operand.hbm [shape: f32[1,4], index: 1, kind: output, shape index: {}]  }
   0x1 LB: > { %s345_s7 = sadd.s32 4294967295, %s325_s6   ;;  %p264_p0 = scmp.ge.s32.totalorder %s325_s6, 1  ;;  %s325_s6 = sphi %s339_s6, %s12_s6  }
   0x2   : > { %p83_p1 = scmp.lt.s32.totalorder %s325_s6, 3 }
   0x4   : > { %p84_p2 = pnand %p264_p0, %p83_p1 }
   0x5   : > { %p98_p3 = scmp.lt.s32.totalorder (!%p84_p2), %s345_s7, 1  ;;  %p267_p4 = scmp.ne.s32.totalorder (!%p84_p2), %s345_s7, 0 }
   0x6   : > { %87 = sbr.rel (%p84_p2) target bundleno = 114 (0x72), region = 24 }
   0xd   : > { %s99_s8 = scalar_select %p98_p3, %s345_s7, 1 }
   0xe   : > { %106 = sbr.rel (%p267_p4) target bundleno = 21 (0x15), region = 28  ;;  %vm107_vm0 = vcmask (!%p267_p4), 24576   ;;  %v327_v0 = vmov (!%p267_p4), 0.0  }
   0xf   : > { %s272_s9 = sshll.u32 %s99_s8, 8  ;;  %108 = vst.msk [vmem:[#allocation2] sm:$0x1] (!%p267_p4), %vm107_vm0, %v327_v0 }
  0x10   : > { %s354_s12 = scalar_lea.vmem %s447_s0, %s272_s9 }
  0x15 PF: > { %v109_v1 = vld [vmem:[%s354_s12] sm:$0xff]  ;;  %v110_v2 = vld [vmem:[%s354_s12 + $0x8] sm:$0xff]  ;;  %v111_v3 = vld [vmem:[%s354_s12 + $0x10] sm:$0xff]  ;;  %vm142_vm1 = vcmask 31744   ;;  %s328_s13 = smov [#allocation2]   ;;  %vm213_vm2 = vcmask 24576  }
  0x16   : > { %v112_v4 = vld [vmem:[%s354_s12 + $0x18] sm:$0xff]  ;;  %v143_v5 = vsel %vm142_vm1, %v109_v1, 0.0  ;;  %v144_v6 = vsel %vm142_vm1, %v110_v2, 0.0  ;;  %v146_v7 = vsel %vm142_vm1, %v111_v3, 0.0  ;;  %v113_v8 = vld [vmem:[%s354_s12 + $0x20] sm:$0xff]  ;;  %v114_v11 = vld [vmem:[%s354_s12 + $0x28] sm:$0xff] }
  0x17   : > { %v145_v9 = vadd.f32 %v144_v6, %v143_v5  ;;  %v148_v10 = vsel %vm142_vm1, %v112_v4, 0.0  ;;  %v150_v13 = vsel %vm142_vm1, %v113_v8, 0.0  ;;  %v115_v14 = vld [vmem:[%s354_s12 + $0x30] sm:$0xff]  ;;  %v152_v16 = vsel %vm142_vm1, %v114_v11, 0.0  ;;  %v116_v17 = vld [vmem:[%s354_s12 + $0x38] sm:$0xff]  ;;  %v117_v20 = vld [vmem:[%s354_s12 + $0x40] sm:$0xff] }
  0x18   : > { %v154_v19 = vsel %vm142_vm1, %v115_v14, 0.0  ;;  %v156_v22 = vsel %vm142_vm1, %v116_v17, 0.0  ;;  %v118_v23 = vld [vmem:[%s354_s12 + $0x48] sm:$0xff]  ;;  %v158_v25 = vsel %vm142_vm1, %v117_v20, 0.0  ;;  %v119_v26 = vld [vmem:[%s354_s12 + $0x50] sm:$0xff]  ;;  %v120_v29 = vld [vmem:[%s354_s12 + $0x58] sm:$0xff] }
  0x19   : > { %v147_v12 = vadd.f32 %v146_v7, %v145_v9  ;;  %v160_v28 = vsel %vm142_vm1, %v118_v23, 0.0  ;;  %v162_v31 = vsel %vm142_vm1, %v119_v26, 0.0  ;;  %v121_v32 = vld [vmem:[%s354_s12 + $0x60] sm:$0xff]  ;;  %v164_v34 = vsel %vm142_vm1, %v120_v29, 0.0  ;;  %v122_v35 = vld [vmem:[%s354_s12 + $0x68] sm:$0xff]  ;;  %v123_v38 = vld [vmem:[%s354_s12 + $0x70] sm:$0xff] }
  0x1a   : > { %v166_v37 = vsel %vm142_vm1, %v121_v32, 0.0  ;;  %v168_v40 = vsel %vm142_vm1, %v122_v35, 0.0  ;;  %v124_v41 = vld [vmem:[%s354_s12 + $0x78] sm:$0xff]  ;;  %v170_v43 = vsel %vm142_vm1, %v123_v38, 0.0  ;;  %v125_v44 = vld [vmem:[%s354_s12 + $0x80] sm:$0xff]  ;;  %v126_v47 = vld [vmem:[%s354_s12 + $0x88] sm:$0xff] }
  0x1b   : > { %v149_v15 = vadd.f32 %v148_v10, %v147_v12  ;;  %v172_v46 = vsel %vm142_vm1, %v124_v41, 0.0  ;;  %v174_v49 = vsel %vm142_vm1, %v125_v44, 0.0  ;;  %v127_v50 = vld [vmem:[%s354_s12 + $0x90] sm:$0xff]  ;;  %v176_v52 = vsel %vm142_vm1, %v126_v47, 0.0  ;;  %v128_v53 = vld [vmem:[%s354_s12 + $0x98] sm:$0xff]  ;;  %v129_v56 = vld [vmem:[%s354_s12 + $0xa0] sm:$0xff] }
  0x1c   : > { %v178_v55 = vsel %vm142_vm1, %v127_v50, 0.0  ;;  %v180_v58 = vsel %vm142_vm1, %v128_v53, 0.0  ;;  %v130_v59 = vld [vmem:[%s354_s12 + $0xa8] sm:$0xff]  ;;  %v182_v61 = vsel %vm142_vm1, %v129_v56, 0.0  ;;  %v131_v62 = vld [vmem:[%s354_s12 + $0xb0] sm:$0xff]  ;;  %v132_v1 = vld [vmem:[%s354_s12 + $0xb8] sm:$0xff] }
  0x1d   : > { %v151_v18 = vadd.f32 %v150_v13, %v149_v15  ;;  %v184_v0 = vsel %vm142_vm1, %v130_v59, 0.0  ;;  %v186_v3 = vsel %vm142_vm1, %v131_v62, 0.0  ;;  %v133_v4 = vld [vmem:[%s354_s12 + $0xc0] sm:$0xff]  ;;  %v188_v6 = vsel %vm142_vm1, %v132_v1, 0.0  ;;  %v134_v7 = vld [vmem:[%s354_s12 + $0xc8] sm:$0xff]  ;;  %v135_v10 = vld [vmem:[%s354_s12 + $0xd0] sm:$0xff] }
  0x1e   : > { %v190_v9 = vsel %vm142_vm1, %v133_v4, 0.0  ;;  %v192_v12 = vsel %vm142_vm1, %v134_v7, 0.0  ;;  %v136_v13 = vld [vmem:[%s354_s12 + $0xd8] sm:$0xff]  ;;  %v194_v15 = vsel %vm142_vm1, %v135_v10, 0.0  ;;  %s222_s14 = sshll.u32 %s328_s13, 4  ;;  %p277_p5 = scmp.eq.s32.totalorder %s345_s7, 1  ;;  %s223_s14 = int_to_ptr.vmem [resolvable:$true] %s222_s14 }
  0x1f   : > { %v153_v21 = vadd.f32 %v152_v16, %v151_v18  ;;  %v137_v16 = vld [vmem:[%s354_s12 + $0xe0] sm:$0xff]  ;;  %v196_v18 = vsel %vm142_vm1, %v136_v13, 0.0  ;;  %s289_s15 = scalar_lea.vmem %s223_s14, 16  ;;  %s295_s16 = scalar_lea.vmem %s223_s14, 32 }
  0x20   : > { %p290_p6 = scmp.ne.s32.totalorder %s223_s14, %s289_s15  ;;  %p296_p9 = scmp.lt.s32.totalorder %s223_s14, %s223_s14 }
  0x21   : > { %v155_v24 = vadd.f32 %v154_v19, %v153_v21  ;;  %v138_v19 = vld [vmem:[%s354_s12 + $0xe8] sm:$0xff]  ;;  %v198_v21 = vsel %vm142_vm1, %v137_v16, 0.0  ;;  %p297_p10 = scmp.lt.s32.totalorder %s295_s16, %s289_s15 }
  0x22   : > { %p291_p7 = pnand %p290_p6, %p277_p5 }
  0x23   : > { %v157_v27 = vadd.f32 %v156_v22, %v155_v24  ;;  %v139_v22 = vld [vmem:[%s354_s12 + $0xf0] sm:$0xff]  ;;  %v200_v24 = vsel %vm142_vm1, %v138_v19, 0.0  ;;  %p298_p11 = por %p297_p10, %p296_p9 }
  0x24   : > { %p292_p8 = pneg %p291_p7 }
  0x25   : > { %v159_v30 = vadd.f32 %v158_v25, %v157_v27  ;;  %v140_v25 = vld [vmem:[%s354_s12 + $0xf8] sm:$0xff]  ;;  %v202_v27 = vsel %vm142_vm1, %v139_v22, 0.0 }
  0x26   : > { %v204_v29 = vsel %vm142_vm1, %v140_v25, 0.0  ;;  %p299_p12 = pnand %p298_p11, %p292_p8 }
  0x27   : > { %v161_v33 = vadd.f32 %v160_v28, %v159_v30 }
  0x29   : > { %v163_v36 = vadd.f32 %v162_v31, %v161_v33 }
  0x2b   : > { %v165_v39 = vadd.f32 %v164_v34, %v163_v36 }
  0x2d   : > { %v167_v42 = vadd.f32 %v166_v37, %v165_v39  ;;  %v141_v37 = vld [vmem:[#allocation2] sm:$0x1] }
  0x2f   : > { %v169_v45 = vadd.f32 %v168_v40, %v167_v42 }
  0x31   : > { %v171_v48 = vadd.f32 %v170_v43, %v169_v45 }
  0x33   : > { %v173_v51 = vadd.f32 %v172_v46, %v171_v48 }
  0x35   : > { %v175_v54 = vadd.f32 %v174_v49, %v173_v51 }
  0x37   : > { %v177_v57 = vadd.f32 %v176_v52, %v175_v54 }
  0x39   : > { %v179_v60 = vadd.f32 %v178_v55, %v177_v57 }
  0x3b   : > { %v181_v63 = vadd.f32 %v180_v58, %v179_v60 }
  0x3d   : > { %v183_v2 = vadd.f32 %v182_v61, %v181_v63 }
  0x3f   : > { %v185_v5 = vadd.f32 %v184_v0, %v183_v2 }
  0x41   : > { %v187_v8 = vadd.f32 %v186_v3, %v185_v5 }
  0x43   : > { %v189_v11 = vadd.f32 %v188_v6, %v187_v8 }
  0x45   : > { %v191_v14 = vadd.f32 %v190_v9, %v189_v11 }
  0x47   : > { %v193_v17 = vadd.f32 %v192_v12, %v191_v14 }
  0x49   : > { %v195_v20 = vadd.f32 %v194_v15, %v193_v17 }
  0x4b   : > { %v197_v23 = vadd.f32 %v196_v18, %v195_v20 }
  0x4d   : > { %v199_v26 = vadd.f32 %v198_v21, %v197_v23 }
  0x4f   : > { %v201_v28 = vadd.f32 %v200_v24, %v199_v26 }
  0x51   : > { %v203_v30 = vadd.f32 %v202_v27, %v201_v28 }
  0x53   : > { %v205_v31 = vadd.f32 %v204_v29, %v203_v30 }
  0x55   : > { %v206_v32 = vrot.slane %v205_v31, 4 }
  0x57   : > { %v207_v33 = vadd.f32 %v206_v32, %v205_v31 }
  0x59   : > { %v208_v34 = vrot.slane %v207_v33, 2 }
  0x5b   : > { %v209_v35 = vadd.f32 %v208_v34, %v207_v33 }
  0x5d   : > { %v210_v36 = vrot.slane %v209_v35, 1 }
  0x5f   : > { %v211_v38 = vadd.f32 %v210_v36, %v209_v35 }
  0x61   : > { %v212_v39 = vadd.f32 %v211_v38, %v141_v37 }
  0x63   : > { %214 = vst.msk [vmem:[#allocation2] sm:$0x1] %vm213_vm2, %v212_v39 }
  0x64   : > { %302 = shalt.err (!%p299_p12)
}
  0x65   : > { %s303_s19 = scalar_lea.hbm %s448_s1, 16 }
  0x66   : > { %p304_p13 = scmp.ne.s32.totalorder %s448_s1, %s303_s19  ;;  %p309_p2 = scmp.lt.u32.totalorder %s303_s19, %s448_s1 }
  0x68   : > { %p305_p0 = pnand %p304_p13, %p277_p5 }
  0x6a   : > { %p306_p1 = pneg %p305_p0 }
  0x6c   : > { %p311_p3 = pnand %p309_p2, %p306_p1 }
  0x6e   : > { %314 = shalt.err (!%p311_p3)
}
  0x6f   : > { %274 = dma.vmem_to_hbm [thread:$0]  (%p277_p5), %s223_s14, 16, %s448_s1, [#allocation3]  }
  0x70   : > { %320 = dma.done.wait (%p277_p5), [#allocation3], 16  }
  0x71   : > { %322 = vsyncadd (%p277_p5), [#allocation3], 4294967280 }
  0x72 PF: > { %s12_s6 = sadd.s32 1, %s325_s6  }
  0x73   : > { %p9_p4 = scmp.ge.s32.totalorder %s12_s6, 4  }
  0x75   :  { %11 = sbr.rel (!%p9_p4) target bundleno = 1 (0x1), region = 55 }
  0x7c   :  { %235 = vsyncpa [#allocation3], 1 }
  0x7d   :  { %237 = vsyncpa [#allocation3 + $0x1], 1 }

</bundles_post_ra>
